<compile_context>
chip_gen: v6e
topology: v6e:2x2x1
jax: 0.10.0
libtpu: 0.0.40
codegen_flags: <defaults>
</compile_context>

<pallas_src>
import math
from functools import partial

import jax
import jax.numpy as jnp
from jax.experimental import pallas as pl
from jax.experimental.pallas import tpu as pltpu


# ----------------------------------------------------------------------------
# Kernels
# ----------------------------------------------------------------------------

def _layernorm_kernel(x_ref, g_ref, b_ref, o_ref, *, eps):
    # x_ref: (tm, K) native dtype ; g_ref/b_ref: (1, K) f32 ; LN math in f32.
    x = x_ref[...].astype(jnp.float32)
    mu = jnp.mean(x, axis=-1, keepdims=True)
    xc = x - mu
    var = jnp.mean(xc * xc, axis=-1, keepdims=True)
    xn = xc * jax.lax.rsqrt(var + eps) * g_ref[...] + b_ref[...]
    o_ref[...] = xn.astype(o_ref.dtype)


def _compute_xn(x_ref, g_ref, b_ref, xn_ref, eps):
    # LayerNorm in f32, result stored into the VMEM scratch in the MXU dtype.
    x = x_ref[...].astype(jnp.float32)
    mu = jnp.mean(x, axis=-1, keepdims=True)
    xc = x - mu
    var = jnp.mean(xc * xc, axis=-1, keepdims=True)
    xn = xc * jax.lax.rsqrt(var + eps) * g_ref[...] + b_ref[...]
    xn_ref[...] = xn.astype(xn_ref.dtype)


def _prenorm_linear_bias_kernel(x_ref, g_ref, b_ref, w_ref, bias_ref, o_ref,
                                xn_ref, *, eps):
    # LayerNorm computed only at the first column tile of each row tile;
    # subsequent column tiles reuse the cached xn (j axis is "arbitrary").
    @pl.when(pl.program_id(1) == 0)
    def _():
        _compute_xn(x_ref, g_ref, b_ref, xn_ref, eps)
    acc = jnp.dot(xn_ref[...], w_ref[...], preferred_element_type=jnp.float32)
    o_ref[...] = (acc + bias_ref[...]).astype(o_ref.dtype)


def _prenorm_linear_nobias_kernel(x_ref, g_ref, b_ref, w_ref, o_ref,
                                  xn_ref, *, eps):
    @pl.when(pl.program_id(1) == 0)
    def _():
        _compute_xn(x_ref, g_ref, b_ref, xn_ref, eps)
    o_ref[...] = jnp.dot(xn_ref[...], w_ref[...],
                         preferred_element_type=jnp.float32).astype(o_ref.dtype)


def _linear_bias_kernel(x_ref, w_ref, bias_ref, o_ref, *, mxu_dtype):
    a = x_ref[...].astype(mxu_dtype)
    acc = jnp.dot(a, w_ref[...], preferred_element_type=jnp.float32)
    o_ref[...] = (acc + bias_ref[...]).astype(o_ref.dtype)


def _linear_nobias_kernel(x_ref, w_ref, o_ref, *, mxu_dtype):
    a = x_ref[...].astype(mxu_dtype)
    o_ref[...] = jnp.dot(a, w_ref[...],
                         preferred_element_type=jnp.float32).astype(o_ref.dtype)


# ----------------------------------------------------------------------------
# Tile selection (VMEM-budget aware)
# ----------------------------------------------------------------------------

_VMEM_BUDGET = 40 << 20   # double-buffered tile footprint target (v7x-safe)


def _round_up(v, m):
    return ((v + m - 1) // m) * m


def _split_rows(M):
    # Single-row-tile shapes: split into 2 row blocks so the "parallel" row
    # axis can use both v7x TensorCores (a 1-long parallel axis idles one TC).
    if M >= 16:
        return _round_up(pl.cdiv(M, 2), 8)
    return M


def _select_matmul_tiles(M, N, K, x_bytes, out_bytes):
    """Largest (tm, tn) whose double-buffered tiles + xn scratch fit the budget."""
    tn_candidates = [c for c in ((N if N <= 2048 else 0), 512, 256)
                     if 0 < c <= N]
    tm_candidates = [1024, 512, 256]

    def footprint(tm, tn):
        return (2 * tm * K * x_bytes          # x tiles (double-buffered)
                + 2 * K * tn * 2              # bf16 weight tiles
                + 2 * tm * tn * out_bytes     # output tiles
                + tm * K * 2                  # xn VMEM scratch (single buffer)
                + 4 * K * 4 + 2 * N * 4)      # gamma / beta / bias (small)

    tm, tn = tm_candidates[-1], tn_candidates[-1]
    found = False
    for tn_c in tn_candidates:
        for tm_c in tm_candidates:
            if footprint(tm_c, tn_c) <= _VMEM_BUDGET:
                tm, tn = tm_c, tn_c
                found = True
                break
        if found:
            break
    # TODO(synk): for pathological K where even (256, 256) exceeds the budget,
    # a K-split (reduction grid axis) would be needed; not implemented here.
    if M <= tm:
        tm = _split_rows(M)
    if N <= tn:
        tn = N
    return tm, tn, footprint(tm, tn)


def _select_ln_tile(M, K, x_bytes, out_bytes):
    tm = 1024
    while tm > 256 and 2 * tm * K * (x_bytes + out_bytes) > _VMEM_BUDGET:
        tm //= 2
    if M <= tm:
        tm = _split_rows(M)
    return tm, 2 * tm * K * (x_bytes + out_bytes)


def _vmem_limit(footprint_bytes):
    # Enough scoped VMEM for the tiles + compiler scratch, but stay well under
    # v7x's 64 MiB physical VMEM per TensorCore.
    return int(min(60 << 20, max(24 << 20, 2 * footprint_bytes)))


# ----------------------------------------------------------------------------
# Wrappers
# ----------------------------------------------------------------------------

def layernorm_pallas(x, gamma, beta, *, eps=1e-5):
    """Standalone LayerNorm (learnable affine) over the last dim; out in x.dtype."""
    orig_shape = x.shape
    K = orig_shape[-1]
    x2 = x.reshape(-1, K)                        # native dtype, no wrapper cast
    M = x2.shape[0]
    xb = x2.dtype.itemsize
    tm, fp = _select_ln_tile(M, K, xb, xb)
    g = gamma.reshape(1, K).astype(jnp.float32)
    b = beta.reshape(1, K).astype(jnp.float32)
    out = pl.pallas_call(
        partial(_layernorm_kernel, eps=eps),
        out_shape=jax.ShapeDtypeStruct((M, K), x2.dtype),
        grid=(pl.cdiv(M, tm),),
        in_specs=[pl.BlockSpec((tm, K), lambda i: (i, 0)),
                  pl.BlockSpec((1, K), lambda i: (0, 0)),
                  pl.BlockSpec((1, K), lambda i: (0, 0))],
        out_specs=pl.BlockSpec((tm, K), lambda i: (i, 0)),
        compiler_params=pltpu.CompilerParams(
            dimension_semantics=("parallel",),
            vmem_limit_bytes=_vmem_limit(fp)),
    )(x2, g, b)
    return out.reshape(orig_shape)


def prenorm_linear_pallas(x, gamma, beta, w_t, bias=None, *, eps=1e-5,
                          mxu_dtype=jnp.bfloat16):
    """Fused fn(LayerNorm(x)) for fn = Linear.

    w_t : (K, N) weight already transposed (and ideally cached in mxu_dtype).
    LayerNorm is computed once per row tile (cached in a VMEM scratch), bf16
    MXU operands with f32 accumulation (set mxu_dtype=jnp.float32 for
    torch-level accuracy), bias fused into the epilogue, output in x.dtype.
    """
    orig_shape = x.shape
    K = orig_shape[-1]
    N = w_t.shape[1]
    x2 = x.reshape(-1, K)
    M = x2.shape[0]
    out_dtype = x2.dtype
    tm, tn, fp = _select_matmul_tiles(M, N, K, x2.dtype.itemsize,
                                      jnp.dtype(out_dtype).itemsize)
    g = gamma.reshape(1, K).astype(jnp.float32)
    b = beta.reshape(1, K).astype(jnp.float32)
    w_t = w_t.astype(mxu_dtype)          # no-op when cached as mxu_dtype

    in_specs = [pl.BlockSpec((tm, K), lambda i, j: (i, 0)),
                pl.BlockSpec((1, K), lambda i, j: (0, 0)),
                pl.BlockSpec((1, K), lambda i, j: (0, 0)),
                pl.BlockSpec((K, tn), lambda i, j: (0, j))]
    args = [x2, g, b, w_t]
    if bias is not None:
        in_specs.append(pl.BlockSpec((1, tn), lambda i, j: (0, j)))
        args.append(bias.reshape(1, N).astype(jnp.float32))
        kernel = partial(_prenorm_linear_bias_kernel, eps=eps)
    else:
        kernel = partial(_prenorm_linear_nobias_kernel, eps=eps)

    out = pl.pallas_call(
        kernel,
        out_shape=jax.ShapeDtypeStruct((M, N), out_dtype),
        grid=(pl.cdiv(M, tm), pl.cdiv(N, tn)),
        in_specs=in_specs,
        out_specs=pl.BlockSpec((tm, tn), lambda i, j: (i, j)),
        scratch_shapes=[pltpu.VMEM((tm, K), mxu_dtype)],
        compiler_params=pltpu.CompilerParams(
            # j ("arbitrary") reuses the LayerNorm cached in the scratch; the
            # row axis stays "parallel" for megacore sharding.
            dimension_semantics=("parallel", "arbitrary"),
            vmem_limit_bytes=_vmem_limit(fp)),
    )(*args)
    return out.reshape(orig_shape[:-1] + (N,))


def linear_pallas(x, w_t, bias=None, *, mxu_dtype=jnp.bfloat16):
    """Plain Linear; w_t is (K, N), bias fused into the epilogue, out in x.dtype."""
    orig_shape = x.shape
    K = orig_shape[-1]
    N = w_t.shape[1]
    x2 = x.reshape(-1, K)
    M = x2.shape[0]
    out_dtype = x2.dtype
    tm, tn, fp = _select_matmul_tiles(M, N, K, x2.dtype.itemsize,
                                      jnp.dtype(out_dtype).itemsize)
    w_t = w_t.astype(mxu_dtype)

    in_specs = [pl.BlockSpec((tm, K), lambda i, j: (i, 0)),
                pl.BlockSpec((K, tn), lambda i, j: (0, j))]
    args = [x2, w_t]
    if bias is not None:
        in_specs.append(pl.BlockSpec((1, tn), lambda i, j: (0, j)))
        args.append(bias.reshape(1, N).astype(jnp.float32))
        kernel = partial(_linear_bias_kernel, mxu_dtype=mxu_dtype)
    else:
        kernel = partial(_linear_nobias_kernel, mxu_dtype=mxu_dtype)

    out = pl.pallas_call(
        kernel,
        out_shape=jax.ShapeDtypeStruct((M, N), out_dtype),
        grid=(pl.cdiv(M, tm), pl.cdiv(N, tn)),
        in_specs=in_specs,
        out_specs=pl.BlockSpec((tm, tn), lambda i, j: (i, j)),
        compiler_params=pltpu.CompilerParams(
            dimension_semantics=("parallel", "parallel"),
            vmem_limit_bytes=_vmem_limit(fp)),
    )(*args)
    return out.reshape(orig_shape[:-1] + (N,))


# ----------------------------------------------------------------------------
# Module equivalents
# ----------------------------------------------------------------------------

class PallasLinear:
    """nn.Linear equivalent (torch default init), matmul on the MXU."""

    def __init__(self, key, in_features, out_features, use_bias=True,
                 mxu_dtype=jnp.bfloat16):
        kw, kb = jax.random.split(key)
        bound = 1.0 / math.sqrt(in_features)
        self.weight = jax.random.uniform(kw, (out_features, in_features),
                                         jnp.float32, -bound, bound)
        self.bias = (jax.random.uniform(kb, (out_features,), jnp.float32,
                                        -bound, bound) if use_bias else None)
        self.mxu_dtype = mxu_dtype
        # Cached once: transposed (K, N) MXU-dtype operand — avoids a
        # per-call transpose+cast HBM pass over the full K*N weight.
        self.weight_t = jnp.transpose(self.weight).astype(mxu_dtype)

    def __call__(self, x):
        return linear_pallas(x, self.weight_t, self.bias,
                             mxu_dtype=self.mxu_dtype)


class PreNorm:
    """Pallas equivalent of the PyTorch PreNorm module."""

    def __init__(self, dim, fn, eps=1e-5):
        self.dim = dim
        self.eps = eps
        self.fn = fn
        # nn.LayerNorm default init (elementwise_affine=True)
        self.gamma = jnp.ones((dim,), jnp.float32)
        self.beta = jnp.zeros((dim,), jnp.float32)

    def __call__(self, x, **kwargs):
        if isinstance(self.fn, PallasLinear) and not kwargs:
            # Fast path: LayerNorm fused into the Linear's matmul prologue,
            # computed once per row tile and cached in VMEM.
            return prenorm_linear_pallas(x, self.gamma, self.beta,
                                         self.fn.weight_t, self.fn.bias,
                                         eps=self.eps,
                                         mxu_dtype=self.fn.mxu_dtype)
        # TODO(synk): arbitrary `fn` cannot be fused in-kernel; apply the
        # standalone Pallas LayerNorm and call fn on its output.
        return self.fn(layernorm_pallas(x, self.gamma, self.beta,
                                        eps=self.eps), **kwargs)


# ----------------------------------------------------------------------------

def _reference(x, gamma, beta, w, b, eps=1e-5):
    mu = x.mean(-1, keepdims=True)
    var = ((x - mu) ** 2).mean(-1, keepdims=True)
    xn = (x - mu) / jnp.sqrt(var + eps) * gamma + beta
    return xn @ w.T + b


if __name__ == "__main__":
    key = jax.random.PRNGKey(0)
    kx, kg, kb, kl = jax.random.split(key, 4)

    batch, seq, dim, hidden = 2, 8, 32, 64
    x = jax.random.normal(kx, (batch, seq, dim), jnp.float32)

    fn = PallasLinear(kl, dim, hidden)
    module = PreNorm(dim, fn)
    # Non-trivial (learned) affine parameters to exercise the gamma/beta path.
    module.gamma = 1.0 + 0.1 * jax.random.normal(kg, (dim,), jnp.float32)
    module.beta = 0.1 * jax.random.normal(kb, (dim,), jnp.float32)

    fused_fwd = jax.jit(lambda inp: module(inp))
    y_fused = fused_fwd(x)
    jax.block_until_ready(y_fused)

    # Unfused path (standalone Pallas LayerNorm + Pallas Linear) as cross-check.
    unfused_fwd = jax.jit(
        lambda inp: fn(layernorm_pallas(inp, module.gamma, module.beta)))
    y_unfused = unfused_fwd(x)
    jax.block_until_ready(y_unfused)

    # Pure-JAX f32 reference.
    y_ref = _reference(x, module.gamma, module.beta, fn.weight, fn.bias)
    mu = x.mean(-1, keepdims=True)
    ln_ref = (x - mu) / jnp.sqrt(
        ((x - mu) ** 2).mean(-1, keepdims=True) + 1e-5
    ) * module.gamma + module.beta
    ln_out = layernorm_pallas(x, module.gamma, module.beta)
    jax.block_until_ready(ln_out)

    assert y_fused.shape == (batch, seq, hidden)
    assert y_fused.dtype == x.dtype
    assert bool(jnp.all(jnp.isfinite(y_fused)))
    # LayerNorm kernel: f32 in/out, tight tolerance.
    assert bool(jnp.allclose(ln_out, ln_ref, rtol=1e-4, atol=1e-4))
    # Fused / unfused PreNorm+Linear: bf16 MXU operands, loose tolerance.
    assert bool(jnp.allclose(y_fused, y_ref, rtol=3e-2, atol=3e-2))
    assert bool(jnp.allclose(y_unfused, y_ref, rtol=3e-2, atol=3e-2))
    assert bool(jnp.allclose(y_fused, y_unfused, rtol=3e-2, atol=3e-2))

    print("KERNEL_OK")
</pallas_src>

<mosaic_0001>
module attributes {stable_mosaic.version = 11 : i64} {
  func.func @_prenorm_linear_bias_kernel(%arg0: i32, %arg1: i32, %arg2: memref<8x32xf32, #tpu.memory_space<vmem>>, %arg3: memref<1x32xf32, #tpu.memory_space<vmem>>, %arg4: memref<1x32xf32, #tpu.memory_space<vmem>>, %arg5: memref<32x64xbf16, #tpu.memory_space<vmem>>, %arg6: memref<1x64xf32, #tpu.memory_space<vmem>>, %arg7: memref<8x64xf32, #tpu.memory_space<vmem>>, %arg8: memref<8x32xbf16, #tpu.memory_space<vmem>>) attributes {dimension_semantics = [#tpu.dimension_semantics<parallel>, #tpu.dimension_semantics<arbitrary>], iteration_bounds = array<i64: 2, 1>, scalar_prefetch = 0 : i64, scratch_operands = 1 : i64, tpu.core_type = #tpu.core_type<tc>, window_params = [{transform_indices = @transform_0, window_bounds = array<i64: 8, 32>}, {pipeline_mode = #tpu.pipeline_mode<synchronous>, transform_indices = @transform_1, window_bounds = array<i64: 1, 32>}, {pipeline_mode = #tpu.pipeline_mode<synchronous>, transform_indices = @transform_2, window_bounds = array<i64: 1, 32>}, {transform_indices = @transform_3, window_bounds = array<i64: 32, 64>}, {transform_indices = @transform_4, window_bounds = array<i64: 1, 64>}, {transform_indices = @transform_5, window_bounds = array<i64: 8, 64>}]} {
    %c0_i32 = arith.constant 0 : i32
    %0 = arith.cmpi eq, %arg1, %c0_i32 : i32
    %1 = arith.extui %0 : i1 to i32
    %c0_i32_0 = arith.constant 0 : i32
    %2 = arith.cmpi ne, %1, %c0_i32_0 : i32
    scf.if %2 {
      %c0_8 = arith.constant 0 : index
      %c0_9 = arith.constant 0 : index
      %10 = vector.load %arg2[%c0_8, %c0_9] : memref<8x32xf32, #tpu.memory_space<vmem>>, vector<8x32xf32>
      %cst_10 = arith.constant dense<0.000000e+00> : vector<8xf32>
      %11 = vector.multi_reduction <add>, %10, %cst_10 [1] : vector<8x32xf32> to vector<8xf32>
      %12 = vector.shape_cast %11 : vector<8xf32> to vector<8x1xf32>
      %cst_11 = arith.constant 3.200000e+01 : f32
      %13 = vector.broadcast %cst_11 : f32 to vector<8x1xf32>
      %14 = arith.divf %12, %13 : vector<8x1xf32>
      %15 = vector.broadcast %14 : vector<8x1xf32> to vector<8x32xf32>
      %16 = arith.subf %10, %15 : vector<8x32xf32>
      %17 = arith.mulf %16, %16 : vector<8x32xf32>
      %cst_12 = arith.constant dense<0.000000e+00> : vector<8xf32>
      %18 = vector.multi_reduction <add>, %17, %cst_12 [1] : vector<8x32xf32> to vector<8xf32>
      %19 = vector.shape_cast %18 : vector<8xf32> to vector<8x1xf32>
      %cst_13 = arith.constant 3.200000e+01 : f32
      %20 = vector.broadcast %cst_13 : f32 to vector<8x1xf32>
      %21 = arith.divf %19, %20 : vector<8x1xf32>
      %cst_14 = arith.constant 9.99999974E-6 : f32
      %22 = vector.broadcast %cst_14 : f32 to vector<8x1xf32>
      %23 = arith.addf %21, %22 : vector<8x1xf32>
      %24 = math.rsqrt %23 : vector<8x1xf32>
      %25 = vector.broadcast %24 : vector<8x1xf32> to vector<8x32xf32>
      %26 = arith.mulf %16, %25 : vector<8x32xf32>
      %c0_15 = arith.constant 0 : index
      %c0_16 = arith.constant 0 : index
      %27 = vector.load %arg3[%c0_15, %c0_16] : memref<1x32xf32, #tpu.memory_space<vmem>>, vector<1x32xf32>
      %28 = vector.broadcast %27 : vector<1x32xf32> to vector<8x32xf32>
      %29 = arith.mulf %26, %28 : vector<8x32xf32>
      %c0_17 = arith.constant 0 : index
      %c0_18 = arith.constant 0 : index
      %30 = vector.load %arg4[%c0_17, %c0_18] : memref<1x32xf32, #tpu.memory_space<vmem>>, vector<1x32xf32>
      %31 = vector.broadcast %30 : vector<1x32xf32> to vector<8x32xf32>
      %32 = arith.addf %29, %31 : vector<8x32xf32>
      %33 = arith.truncf %32 : vector<8x32xf32> to vector<8x32xbf16>
      %c0_19 = arith.constant 0 : index
      %c0_20 = arith.constant 0 : index
      %34 = vector.load %arg8[%c0_19, %c0_20] : memref<8x32xbf16, #tpu.memory_space<vmem>>, vector<8x32xbf16>
      tpu.vector_store %arg8[%c0_19, %c0_20], %33 {strides = array<i32>} : memref<8x32xbf16, #tpu.memory_space<vmem>>, vector<8x32xbf16>,
    } else {
    }
    %c0 = arith.constant 0 : index
    %c0_1 = arith.constant 0 : index
    %3 = vector.load %arg8[%c0, %c0_1] : memref<8x32xbf16, #tpu.memory_space<vmem>>, vector<8x32xbf16>
    %c0_2 = arith.constant 0 : index
    %c0_3 = arith.constant 0 : index
    %4 = vector.load %arg5[%c0_2, %c0_3] : memref<32x64xbf16, #tpu.memory_space<vmem>>, vector<32x64xbf16>
    %cst = arith.constant dense<0.000000e+00> : vector<8x64xf32>
    %5 = tpu.matmul %3, %4, %cst {dimension_numbers = #tpu.dot_dimension_numbers<[1], [0], [0], [1], [0, 0, 1, 1], [], []>} : vector<8x32xbf16>, vector<32x64xbf16>, vector<8x64xf32> -> vector<8x64xf32>
    %c0_4 = arith.constant 0 : index
    %c0_5 = arith.constant 0 : index
    %6 = vector.load %arg6[%c0_4, %c0_5] : memref<1x64xf32, #tpu.memory_space<vmem>>, vector<1x64xf32>
    %7 = vector.broadcast %6 : vector<1x64xf32> to vector<8x64xf32>
    %8 = arith.addf %5, %7 : vector<8x64xf32>
    %c0_6 = arith.constant 0 : index
    %c0_7 = arith.constant 0 : index
    %9 = vector.load %arg7[%c0_6, %c0_7] : memref<8x64xf32, #tpu.memory_space<vmem>>, vector<8x64xf32>
    tpu.vector_store %arg7[%c0_6, %c0_7], %8 {strides = array<i32>} : memref<8x64xf32, #tpu.memory_space<vmem>>, vector<8x64xf32>,
    return
  }
  func.func @transform_0(%arg0: i32, %arg1: i32) -> (i32, i32) {
    %c0_i32 = arith.constant 0 : i32
    %c0_i32_0 = arith.constant 0 : i32
    return %arg0, %c0_i32 : i32, i32
  }
  func.func @transform_1(%arg0: i32, %arg1: i32) -> (i32, i32) {
    %c0_i32 = arith.constant 0 : i32
    %c0_i32_0 = arith.constant 0 : i32
    %c0_i32_1 = arith.constant 0 : i32
    return %c0_i32, %c0_i32_0 : i32, i32
  }
  func.func @transform_2(%arg0: i32, %arg1: i32) -> (i32, i32) {
    %c0_i32 = arith.constant 0 : i32
    %c0_i32_0 = arith.constant 0 : i32
    %c0_i32_1 = arith.constant 0 : i32
    return %c0_i32, %c0_i32_0 : i32, i32
  }
  func.func @transform_3(%arg0: i32, %arg1: i32) -> (i32, i32) {
    %c0_i32 = arith.constant 0 : i32
    %c0_i32_0 = arith.constant 0 : i32
    return %c0_i32, %arg1 : i32, i32
  }
  func.func @transform_4(%arg0: i32, %arg1: i32) -> (i32, i32) {
    %c0_i32 = arith.constant 0 : i32
    %c0_i32_0 = arith.constant 0 : i32
    return %c0_i32, %arg1 : i32, i32
  }
  func.func @transform_5(%arg0: i32, %arg1: i32) -> (i32, i32) {
    %c0_i32 = arith.constant 0 : i32
    return %arg0, %arg1 : i32, i32
  }
}

</mosaic_0001>

<bundles_post_ra>
// kernel: _lambda_.1
= control target key start
LH: loop header
LB: loop body
LE: loop exit
PB: predicated region body
PF: predicated region fallthrough
CT: control target
= control target key end

     0   :  { %s1004_s0 = inlined_call_operand.hbm [shape: f32[16,32], index: 0, kind: input, shape index: {}]   ;;  %s1005_s1 = inlined_call_operand.vmem [shape: f32[1,32], index: 1, kind: input, shape index: {}]   ;;  %s1006_s2 = inlined_call_operand.vmem [shape: f32[1,32], index: 2, kind: input, shape index: {}]   ;;  %s1007_s3 = inlined_call_operand.hbm [shape: bf16[32,64], index: 3, kind: input, shape index: {}]   ;;  %s1008_s4 = inlined_call_operand.vmem [shape: f32[1,64], index: 4, kind: input, shape index: {}]   ;;  %s1009_s5 = inlined_call_operand.hbm [shape: f32[16,64], index: 5, kind: output, shape index: {}]  }
   0x1   :  { %1012 = sst [smem:[#allocation13_spill]] %s1007_s3 }
   0x2   :  { %10 = vsyncpa [#allocation4], 0 }
   0x3   :  { %12 = vsyncpa [#allocation4 + $0x1], 0 }
   0x4   :  { %13 = vsyncpa [#allocation7], 0 }
   0x5   :  { %14 = vsyncpa [#allocation5], 0 }
   0x6   :  { %16 = vsyncpa [#allocation5 + $0x1], 0  ;;  %s809_s18 = smov 0   ;;  %s811_s19 = smov 0  }
   0x7   :  { %s813_s20 = smov 0   ;;  %s815_s21 = smov 0  }
   0x8   :  { %s817_s22 = smov 0   ;;  %s819_s23 = smov 0  }
   0x9 LB: > { %s518_s24 = sadd.s32 4294967295, %s770_s23   ;;  %s519_s25 = sadd.s32 4294967294, %s770_s23   ;;  %s770_s23 = sphi %s819_s23, %s22_s23   ;;  %s766_s22 = sphi %s817_s22, %s1032_s22   ;;  %s762_s21 = sphi %s815_s21, %s1031_s21   ;;  %s758_s20 = sphi %s813_s20, %s1030_s20   ;;  %s754_s19 = sphi %s811_s19, %s1029_s19   ;;  %s750_s18 = sphi %s809_s18, %s1028_s18  }
   0xa   : > { %p54_p0 = scmp.ne.s32.totalorder %s754_s19, %s750_s18  ;;  %p843_p1 = scmp.eq.s32.totalorder %s518_s24, 0 }
   0xb   : > { %p847_p2 = scmp.eq.s32.totalorder %s518_s24, 1  ;;  %p180_p3 = scmp.eq.s32.totalorder %s519_s25, 1 }
   0xc   : > { %p853_p4 = por %p843_p1, %p54_p0  ;;  %p520_p5 = scmp.ge.s32.totalorder %s770_s23, 1 }
   0xd   : > { %p858_p6 = por %p180_p3, %p54_p0  ;;  %p187_p7 = scmp.lt.s32.totalorder %s770_s23, 3 }
   0xe   : > { %s1015_s28 = scalar_select %p853_p4, 1, 0 }
   0xf   : > { %s1016_s29 = scalar_select %p858_p6, 1, 0 }
  0x10   : > { %p863_p8 = pnand %p520_p5, %p187_p7  ;;  %s772_s6 = smov [#allocation6]  }
  0x11   : > { %s207_s7 = sshll.u32 %s772_s6, 4  ;;  %s34_s9 = sadd.s32 1, %s766_s22  ;;  %s208_s7 = int_to_ptr.vmem [resolvable:$true] %s207_s7 }
  0x12   : > { %p559_p9 = pneg %p863_p8  ;;  %s643_s10 = scalar_lea.vmem %s208_s7, 256 }
  0x13   : > { %p644_p13 = scmp.ne.s32.totalorder %s208_s7, %s643_s10  ;;  %p651_p5 = scmp.lt.s32.totalorder %s208_s7, %s208_s7 }
  0x14   : > { %p872_p11 = pnand %p559_p9, %p843_p1  ;;  %p652_p7 = scmp.lt.s32.totalorder %s643_s10, %s643_s10 }
  0x16   : > { %p634_p12 = pneg %p872_p11  ;;  %p653_p6 = por %p652_p7, %p651_p5 }
  0x18   : > { %p646_p0 = pnand %p644_p13, %p634_p12 }
  0x1a   : > { %p647_p3 = pneg %p646_p0 }
  0x1c   : > { %p654_p4 = pnand %p653_p6, %p647_p3 }
  0x1e   : > { %657 = shalt.err (!%p654_p4)
}
  0x1f   : > { %s773_s11 = smov 64   ;;  %s774_s12 = smov 4  }
  0x20   : > { %s1019_s3 = sld [smem:[#allocation13_spill]]  ;;  %p36_p6 = scmp.ge.s32.totalorder %s34_s9, 2 }
  0x21   : > { %s41_s15 = sadd.s32 1, %s758_s20  ;;  %p48_p4 = scmp.ne.s32.totalorder %s758_s20, %s754_s19 }
  0x22   : > { %p49_p9 = scmp.eq.s32.totalorder %s770_s23, 0  ;;  %s1034_s9 = smov (%p36_p6, %s34_s9), 0 }
  0x23   : > { %1020 = sst [smem:[#allocation12_spill]] %s1034_s9  ;;  %p896_p13 = por %p847_p2, %p48_p4 }
  0x24   : > { %p890_p12 = por %p49_p9, %p48_p4  ;;  %s38_s24 = ssub.s32 %s766_s22, %s1034_s9 }
  0x25   : > { %p572_p0 = scmp.lt.s32.totalorder %s770_s23, 2  ;;  %s227_s25 = sand.u32 1, %s758_s20  }
  0x26   : > { %562 = dma.hbm_to_vmem [thread:$0]  (!%p872_p11), %s1019_s3, 256, %s208_s7, [#allocation7], %s773_s11, %s773_s11, %s774_s12  }
  0x27   : > { %p39_p11 = scmp.eq.s32.totalorder %s38_s24, 0  ;;  %s524_s6 = sshll.u32 %s227_s25, 3 }
  0x28   : > { %s525_s8 = sshll.u32 %s766_s22, 7  ;;  %s231_s13 = scalar_lea.vmem [#allocation3], %s524_s6 }
  0x29   : > { %s905_s7 = scalar_select %p39_p11, %s758_s20, %s41_s15  }
  0x2a   : > { %s236_s12 = scalar_lea.hbm %s1004_s0, %s525_s8  ;;  %s238_s14 = sshll.u32 %s231_s13, 4  ;;  %s239_s14 = int_to_ptr.vmem [resolvable:$true] %s238_s14 }
  0x2b   : > { %p913_p2 = pnand %p572_p0, %p890_p12  ;;  %s228_s3 = scalar_lea.sflag [#allocation4], %s227_s25 }
  0x2c   : > { %s671_s24 = scalar_lea.vmem %s239_s14, 128  ;;  %s775_s15 = smov [#allocation3]  }
  0x2d   : > { %p660_p3 = pneg %p913_p2  ;;  %p672_p5 = scmp.ne.s32.totalorder %s239_s14, %s671_s24 }
  0x2e   : > { %s676_s9 = sshll.u32 %s775_s15, 4  ;;  %s677_s9 = int_to_ptr.vmem [resolvable:$false] %s676_s9 }
  0x2f   : > { %p674_p7 = pnand %p672_p5, %p660_p3  ;;  %s678_s8 = scalar_lea.vmem %s677_s9, 256 }
  0x30   : > { %p679_p4 = scmp.lt.s32.totalorder %s239_s14, %s677_s9  ;;  %p680_p9 = scmp.lt.s32.totalorder %s678_s8, %s671_s24 }
  0x31   : > { %p675_p6 = pneg %p674_p7 }
  0x32   : > { %p681_p11 = por %p680_p9, %p679_p4 }
  0x34   : > { %p682_p10 = pnand %p681_p11, %p675_p6 }
  0x36   : > { %685 = shalt.err (!%p682_p10)
}
  0x37   : > { %566 = dma.hbm_to_vmem [thread:$0]  (!%p913_p2), %s236_s12, 128, %s239_s14, %s228_s3  }
  0x38   : > { %247 = sbr.rel (%p863_p8) target bundleno = 592 (0x250), region = 40  ;;  %s924_s16 = sand.u32 (!%p863_p8), 1, %s754_s19  }
  0x39   : > { %s527_s25 = sshll.u32 (!%p863_p8), %s924_s16, 3  ;;  %s250_s6 = scalar_lea.sflag (!%p863_p8), [#allocation4], %s924_s16 }
  0x3a   : > { %s253_s9 = scalar_lea.vmem (!%p863_p8), [#allocation3], %s527_s25  ;;  %p1024_p12 = scmp.ne.s32.totalorder (!%p863_p8), %s1015_s28, 0 }
  0x3d   : > { %737 = dma.done.wait (%p1024_p12), %s250_s6, 128  }
  0x3e   : > { %739 = vsyncadd (%p1024_p12), %s250_s6, 4294967168 }
  0x3f   : > { %741 = dma.done.wait (%p843_p1), [#allocation7], 256  }
  0x40   : > { %743 = vsyncadd (%p843_p1), [#allocation7], 4294967040  ;;  %vm296_vm0 = vcmask 261120   ;;  %v295_v0 = vld [vmem:[%s253_s9] sm:$0xff]  ;;  %v628_v7 = vld [vmem:[#allocation6 + $0x8] sm:$0xff]   ;;  %v776_v8 = vmov 0.0  }
  0x41   : > { %v297_v1 = vsel %vm296_vm0, %v295_v0, 0.0  ;;  %543 = vmatprep.subr.bf16.mxu0 %v776_v8  ;;  %v629_v9 = vld [vmem:[#allocation6] sm:$0xff]   ;;  %vm777_vm1 = vmmov 0   ;;  %v530_v14 = vld [vmem:[%s1005_s1] ss:$0 sm:$0xff]  ;;  %vm328_vm2 = vcmask 257024  }
  0x42   : > { %298 = vadd.xlane.f32.xlu0 %v297_v1  ;;  %544 = vmatpush3.bf16.msra.mxu0 %v628_v7  ;;  %v531_v16 = vld [vmem:[%s1006_s2] ss:$0 sm:$0xff]  ;;  %s537_s12 = sshll.u32 %s762_s21, 7  ;;  %s286_s13 = scalar_lea.vmem [#allocation8], %s527_s25  ;;  %vm398_vm3 = vcmask 523264  }
  0x43   : > { %547 = vmatprep.mubr.msk.bf16.mxu0 %vm777_vm1, %v776_v8  ;;  %545 = vmatprep.subr.bf16.mxu0 %v776_v8  ;;  %v532_v21 = vld [vmem:[%s1008_s4] ss:$0 sm:$0xff]  ;;  %s415_s14 = sshll.u32 %s286_s13, 4  ;;  %s956_s15 = scalar_lea.hbm %s1009_s5, %s537_s12  ;;  %s958_s14 = int_to_ptr.vmem [resolvable:$true] %s415_s14 }
  0x44   : > { %s401_s21 = scalar_lea.sflag [#allocation5], %s924_s16  ;;  %s686_s8 = scalar_lea.vmem %s958_s14, 128 }
  0x45   : > { %p687_p1 = scmp.ne.s32.totalorder %s958_s14, %s686_s8  ;;  %s778_s25 = smov [#allocation8]  }
  0x46   : > { %546 = vmatpush3.bf16.msra.mxu0 %v629_v9  ;;  %s690_s6 = sshll.u32 %s778_s25, 4  ;;  %s691_s6 = int_to_ptr.vmem [resolvable:$false] %s690_s6 }
  0x47   : > { %p688_p8 = pnand %p687_p1, %p896_p13  ;;  %s692_s9 = scalar_lea.vmem %s691_s6, 256 }
  0x48   : > { %p693_p0 = scmp.lt.s32.totalorder %s958_s14, %s691_s6  ;;  %p694_p2 = scmp.lt.s32.totalorder %s692_s9, %s686_s8 }
  0x49   : > { %p689_p10 = pneg %p688_p8 }
  0x4a   : > { %p695_p3 = por %p694_p2, %p693_p0 }
  0x4c   : > { %p696_p5 = pnand %p695_p3, %p689_p10 }
  0xcb   : > { %v299_v2 = vpop.xlane.xlu0 %298 }
  0xcc   : > { %v301_v3 = vmul.f32 0.03125, %v299_v2 }
  0xce   : > { %v302_v4 = vsub.f32 %v295_v0, %v301_v3 }
  0xd0   : > { %v303_v5 = vmul.f32 %v302_v4, %v302_v4 }
  0xd2   : > { %v304_v6 = vsel %vm296_vm0, %v303_v5, 0.0 }
  0xd3   : > { %305 = vadd.xlane.f32.xlu0 %v304_v6 }
 0x15c   : > { %v306_v10 = vpop.xlane.xlu0 %305 }
 0x15d   : > { %v307_v11 = vmul.f32 0.03125, %v306_v10 }
 0x15f   : > { %v308_v12 = vadd.f32 1e-05, %v307_v11 }
 0x161   : > { %630 = vrsqrt.f32 %v308_v12 }
 0x16e   : > { %v631_v13 = vpop.eup %630 }
 0x16f   : > { %v310_v15 = vmul.f32 %v631_v13, %v302_v4 }
 0x171   : > { %v318_v17 = vmul.f32 %v530_v14, %v310_v15 }
 0x173   : > { %v326_v18 = vadd.f32 %v531_v16, %v318_v17 }
 0x175   : > { %v327_v19 = vpack.c.bf16 %v326_v18, %v326_v18 }
 0x177   : > { %329 = vst.msk [vmem:[#allocation2] sm:$0xf] %vm328_vm2, %v327_v19 }
 0x17e   : > { %v330_v20 = vld [vmem:[#allocation2] sm:$0xf] }
 0x17f   : > { %548 = vmatmul.mubr.msk.bf16.vlgmr.msra.gmra.mxu0 %vm296_vm0, %v330_v20 }
 0x23f   : > { %v392_v22 = vpop.f32.mrf.mxu0 }
 0x240   : > { %v393_v23 = vadd.f32 %v532_v21, %v392_v22 }
 0x241   : > { %v549_v24 = vpop.f32.mrf.mxu0 }
 0x242   : > { %399 = vst.msk [vmem:[%s286_s13] sm:$0xff] %vm398_vm3, %v393_v23 }
 0x243   : > { %v395_v25 = vpop.f32.mrf.mxu0 }
 0x244   : > { %699 = shalt.err (!%p696_p5)
}
 0x245   : > { %s700_s3 = scalar_lea.hbm %s956_s15, 128  ;;  %s704_s28 = scalar_lea.hbm %s1009_s5, 256 }
 0x246   : > { %p701_p7 = scmp.ne.s32.totalorder %s956_s15, %s700_s3  ;;  %p705_p9 = scmp.lt.s32.totalorder %s956_s15, %s1009_s5 }
 0x247   : > { %p706_p11 = scmp.lt.s32.totalorder %s704_s28, %s700_s3 }
 0x248   : > { %p702_p6 = pnand %p701_p7, %p896_p13 }
 0x249   : > { %p707_p12 = por %p706_p11, %p705_p9 }
 0x24a   : > { %p703_p4 = pneg %p702_p6 }
 0x24c   : > { %p708_p1 = pnand %p707_p12, %p703_p4 }
 0x24e   : > { %711 = shalt.err (!%p708_p1)
}
 0x24f   : > { %557 = dma.vmem_to_hbm [thread:$0]  (%p896_p13), %s958_s14, 128, %s956_s15, %s401_s21   ;;  %v550_v26 = vpop.f32.mrf.mxu0 }
 0x250 PF: > { %s427_s11 = sand.u32 1, %s750_s18   ;;  %p1025_p8 = scmp.ne.s32.totalorder %s1016_s29, 0 }
 0x251   : > { %p1026_p10 = scmp.ge.s32.totalorder %s770_s23, 2  ;;  %s428_s12 = scalar_lea.sflag [#allocation5], %s427_s11 }
 0x253   : > { %p568_p0 = pnand %p1026_p10, %p1025_p8 }
 0x255   : > { %p569_p2 = pneg %p568_p0 }
 0x257   : > { %745 = dma.done.wait (%p569_p2), %s428_s12, 128  }
 0x258   : > { %747 = vsyncadd (%p569_p2), %s428_s12, 4294967168  ;;  %s22_s23 = sadd.s32 1, %s770_s23   ;;  %s1027_s17 = sld [smem:[#allocation12_spill]] }
 0x259   : > { %p19_p3 = scmp.ge.s32.totalorder %s22_s23, 4   ;;  %s1028_s18 = smov %s754_s19 }
 0x25a   : > { %s1029_s19 = smov %s758_s20  ;;  %s1030_s20 = smov %s905_s7 }
 0x25b   : > { %s1031_s21 = smov %s766_s22  ;;  %21 = sbr.rel (!%p19_p3) target bundleno = 9 (0x9), region = 97 }
 0x25e   : > { %s1032_s22 = smov %s1027_s17 }
 0x260   :  { %433 = vsyncpa [#allocation4], 1 }
 0x261   :  { %435 = vsyncpa [#allocation4 + $0x1], 1 }
 0x262   :  { %436 = vsyncpa [#allocation7], 1 }
 0x263   :  { %437 = vsyncpa [#allocation5], 1 }
 0x264   :  { %439 = vsyncpa [#allocation5 + $0x1], 1 }

</bundles_post_ra>
